<compile_context>
chip_gen: v5e
topology: v5e:2x2
jax: 0.10.0
libtpu: 0.0.40
codegen_flags: <defaults>
</compile_context>

<pallas_src>
import functools

import jax
import jax.numpy as jnp
from jax.experimental import pallas as pl
from jax.experimental.pallas import tpu as pltpu

# Real ResNet-50 depth is (3, 4, 6, 3) with stem width 64; reduced width here
# so the demo runs at toy scale (channel dims are zero-padded to 128 lanes).
LAYERS = (3, 4, 6, 3)
WIDTH = 8            # real ResNet-50 uses 64
BN_EPS = 1e-5
LANE = 128
VMEM_LIMIT = 32 * 1024 * 1024   # explicit budget, safe on v5e/v6e/v7x


def _round_up(x, m):
    return (x + m - 1) // m * m


# ---------------------------------------------------------------------------
# Pallas kernels
# ---------------------------------------------------------------------------
def _mm_kernel(a_ref, w_ref, b_ref, o_ref, acc_ref, *, relu):
    @pl.when(pl.program_id(2) == 0)
    def _():
        acc_ref[...] = jnp.zeros_like(acc_ref)

    acc_ref[...] += jnp.dot(a_ref[...], w_ref[...],
                            preferred_element_type=jnp.float32)

    @pl.when(pl.program_id(2) == pl.num_programs(2) - 1)
    def _():
        out = acc_ref[...] + b_ref[...]
        if relu:
            out = jnp.maximum(out, 0.0)
        o_ref[...] = out.astype(o_ref.dtype)


def _mm_res_kernel(a_ref, w_ref, b_ref, r_ref, o_ref, acc_ref, *, relu):
    @pl.when(pl.program_id(2) == 0)
    def _():
        acc_ref[...] = jnp.zeros_like(acc_ref)

    acc_ref[...] += jnp.dot(a_ref[...], w_ref[...],
                            preferred_element_type=jnp.float32)

    @pl.when(pl.program_id(2) == pl.num_programs(2) - 1)
    def _():
        out = acc_ref[...] + b_ref[...] + r_ref[...].astype(jnp.float32)
        if relu:
            out = jnp.maximum(out, 0.0)
        o_ref[...] = out.astype(o_ref.dtype)


def _maxpool_kernel(p_ref, o_ref):
    # p_ref: (TM, 9, C) pooling-window elements -> max over the window axis.
    o_ref[...] = jnp.max(p_ref[...].astype(jnp.float32), axis=1).astype(o_ref.dtype)


def _pool_embed_kernel(x_ref, w_ref, b_ref, o_ref):
    # x_ref: (1, H*W, C) -> mean over spatial (AdaptiveAvgPool2d(1)) fused with
    # the embedding Linear: (1, C) @ (C, E) + b.
    pooled = jnp.mean(x_ref[...].astype(jnp.float32), axis=1)            # (1, C)
    acc = jnp.dot(pooled.astype(jnp.bfloat16), w_ref[...],
                  preferred_element_type=jnp.float32)                    # (1, E)
    o_ref[...] = (acc + b_ref[...])[None]                                # (1, 1, E)


# ---------------------------------------------------------------------------
# Tiled matmul + bias [+ residual] [+ ReLU]
# ---------------------------------------------------------------------------
def matmul_bias_act(a, w, b, *, relu, residual=None, out_dtype=jnp.float32):
    """out = act(a @ w + b [+ residual]) tiled over (M, N, K) with f32 acc."""
    M, K = a.shape
    Kw, N = w.shape
    assert K == Kw

    TN = LANE
    N_pad = _round_up(N, TN)

    if M > 256:
        TM = 256
        M_pad = _round_up(M, TM)
    else:
        M_pad = _round_up(M, 16)
        TM = M_pad

    K_pad = _round_up(K, LANE)
    if K_pad <= 512:
        TK = K_pad
    else:
        TK = LANE
        for cand in (512, 384, 256, 128):
            if K_pad % cand == 0:
                TK = cand
                break

    a_p = jnp.pad(a.astype(jnp.bfloat16), ((0, M_pad - M), (0, K_pad - K)))
    w_p = jnp.pad(w.astype(jnp.bfloat16), ((0, K_pad - K), (0, N_pad - N)))
    b_p = jnp.pad(b.astype(jnp.float32), ((0, N_pad - N),)).reshape(1, N_pad)

    grid = (M_pad // TM, N_pad // TN, K_pad // TK)

    a_spec = pl.BlockSpec((TM, TK), lambda i, j, k: (i, k))
    w_spec = pl.BlockSpec((TK, TN), lambda i, j, k: (k, j))
    b_spec = pl.BlockSpec((1, TN), lambda i, j, k: (0, j))
    o_spec = pl.BlockSpec((TM, TN), lambda i, j, k: (i, j))

    if residual is None:
        kernel = functools.partial(_mm_kernel, relu=relu)
        in_specs = [a_spec, w_spec, b_spec]
        args = (a_p, w_p, b_p)
        fuse = [True, False, False]
    else:
        r_p = jnp.pad(residual.astype(jnp.bfloat16),
                      ((0, M_pad - M), (0, N_pad - N)))
        r_spec = pl.BlockSpec((TM, TN), lambda i, j, k: (i, j))
        kernel = functools.partial(_mm_res_kernel, relu=relu)
        in_specs = [a_spec, w_spec, b_spec, r_spec]
        args = (a_p, w_p, b_p, r_p)
        fuse = [True, False, False, True]

    out = pl.pallas_call(
        kernel,
        grid=grid,
        in_specs=in_specs,
        out_specs=o_spec,
        out_shape=jax.ShapeDtypeStruct((M_pad, N_pad), out_dtype),
        scratch_shapes=[pltpu.VMEM((TM, TN), jnp.float32)],
        compiler_params=pltpu.CompilerParams(
            dimension_semantics=("parallel", "parallel", "arbitrary"),
            vmem_limit_bytes=VMEM_LIMIT,
            allow_input_fusion=fuse,
        ),
    )(*args)
    return out[:M, :N]


# ---------------------------------------------------------------------------
# Plain-JAX glue: im2col patch extraction
# ---------------------------------------------------------------------------
def _extract_patches(x, kh, kw, stride, pad, pad_value=0.0):
    """x: (B,H,W,C) NHWC -> (B,Ho,Wo, kh*kw*C), (ki,kj,c) channel-fastest."""
    B, H, W, C = x.shape
    xp = jnp.pad(x, ((0, 0), (pad, pad), (pad, pad), (0, 0)),
                 constant_values=pad_value)
    Ho = (H + 2 * pad - kh) // stride + 1
    Wo = (W + 2 * pad - kw) // stride + 1
    cols = []
    for ki in range(kh):
        for kj in range(kw):
            cols.append(xp[:, ki:ki + stride * Ho:stride,
                           kj:kj + stride * Wo:stride, :])
    return jnp.concatenate(cols, axis=-1), Ho, Wo


@functools.partial(jax.jit, static_argnames=("k", "stride", "pad", "relu"))
def conv_bn(x, w_mat, bias, residual, *, k, stride, pad, relu):
    """Conv2d (no bias) + folded eval-mode BN [+ residual] [+ ReLU]."""
    B = x.shape[0]
    patches, Ho, Wo = _extract_patches(x, k, k, stride, pad)
    a = patches.reshape(B * Ho * Wo, -1)
    r = None if residual is None else residual.reshape(B * Ho * Wo, -1)
    out = matmul_bias_act(a, w_mat, bias, relu=relu, residual=r,
                          out_dtype=jnp.bfloat16)
    return out.reshape(B, Ho, Wo, -1)


@jax.jit
def maxpool_3x3_s2(x):
    B, H, W, C = x.shape
    patches, Ho, Wo = _extract_patches(x, 3, 3, 2, 1, pad_value=-1e30)
    M = B * Ho * Wo
    p = patches.reshape(M, 9, C)
    if M >= 512:
        TM = 256
        M_pad = _round_up(M, TM)
    else:
        M_pad = _round_up(M, 8)
        TM = M_pad
    p = jnp.pad(p, ((0, M_pad - M), (0, 0), (0, 0)), constant_values=-1e30)
    out = pl.pallas_call(
        _maxpool_kernel,
        grid=(M_pad // TM,),
        in_specs=[pl.BlockSpec((TM, 9, C), lambda i: (i, 0, 0))],
        out_specs=pl.BlockSpec((TM, C), lambda i: (i, 0)),
        out_shape=jax.ShapeDtypeStruct((M_pad, C), x.dtype),
        compiler_params=pltpu.CompilerParams(
            dimension_semantics=("parallel",),
            vmem_limit_bytes=VMEM_LIMIT,
            allow_input_fusion=[True],
        ),
    )(p)
    return out[:M].reshape(B, Ho, Wo, C)


@jax.jit
def avgpool_embed(x, w, b):
    """Fused AdaptiveAvgPool2d(1) + flatten + Linear (one Pallas kernel)."""
    B, H, W, C = x.shape
    E = w.shape[1]
    xr = x.reshape(B, H * W, C)
    out = pl.pallas_call(
        _pool_embed_kernel,
        grid=(B,),
        in_specs=[pl.BlockSpec((1, H * W, C), lambda i: (i, 0, 0)),
                  pl.BlockSpec((C, E), lambda i: (0, 0)),
                  pl.BlockSpec((1, E), lambda i: (0, 0))],
        out_specs=pl.BlockSpec((1, 1, E), lambda i: (i, 0, 0)),
        out_shape=jax.ShapeDtypeStruct((B, 1, E), jnp.float32),
        compiler_params=pltpu.CompilerParams(
            dimension_semantics=("parallel",),
            vmem_limit_bytes=VMEM_LIMIT,
        ),
    )(xr, w.astype(jnp.bfloat16), b.astype(jnp.float32).reshape(1, E))
    return out.reshape(B, E)


# ---------------------------------------------------------------------------
# Parameters (deterministic stand-ins), channel-padded to 128-lane multiples
# ---------------------------------------------------------------------------
def _pad_axis(x, target, axis):
    pad = [(0, 0)] * x.ndim
    pad[axis] = (0, target - x.shape[axis])
    return jnp.pad(x, pad)


def _init_conv_bn(key, cin, cout, k, cin_store, cout_store):
    """Conv(no bias)+BN folded to (W[k*k*cin_store, cout_store] bf16, b f32)."""
    kw_, k1, k2, k3, k4 = jax.random.split(key, 5)
    fan_in = cin * k * k
    w = jax.random.normal(kw_, (cout, cin, k, k), jnp.float32) / jnp.sqrt(fan_in)
    gamma = 1.0 + 0.1 * jax.random.normal(k1, (cout,), jnp.float32)
    beta = 0.1 * jax.random.normal(k2, (cout,), jnp.float32)
    mean = 0.1 * jax.random.normal(k3, (cout,), jnp.float32)
    var = 0.5 + jax.random.uniform(k4, (cout,), jnp.float32)
    scale = gamma / jnp.sqrt(var + BN_EPS)
    w_f = w * scale[:, None, None, None]
    b_f = beta - mean * scale
    # (Cout,Cin,KH,KW) -> (KH,KW,Cin,Cout); zero-pad Cin/Cout to stored (lane-
    # dense) widths so padded activation channels contribute nothing.
    w_t = jnp.transpose(w_f, (2, 3, 1, 0))
    w_t = _pad_axis(_pad_axis(w_t, cin_store, 2), cout_store, 3)
    w_mat = w_t.reshape(k * k * cin_store, cout_store).astype(jnp.bfloat16)
    b_pad = _pad_axis(b_f, cout_store, 0)     # f32 bias
    return w_mat, b_pad


def make_params(key, *, embed_size, width=WIDTH, layers=LAYERS):
    keys = iter(jax.random.split(key, 256))
    stem_out = _round_up(width, LANE)
    params = {"stem": _init_conv_bn(next(keys), 3, width, 7, 3, stem_out)}
    stages = []
    in_c, in_s = width, stem_out
    widths = [width, width * 2, width * 4, width * 8]
    for si, (nblocks, w_) in enumerate(zip(layers, widths)):
        first_stride = 1 if si == 0 else 2
        out_c = w_ * 4
        w_s = _round_up(w_, LANE)
        out_s = _round_up(out_c, LANE)
        blocks = []
        for bi in range(nblocks):
            s = first_stride if bi == 0 else 1
            blk = {
                "stride": s,
                "conv1": _init_conv_bn(next(keys), in_c, w_, 1, in_s, w_s),
                "conv2": _init_conv_bn(next(keys), w_, w_, 3, w_s, w_s),
                "conv3": _init_conv_bn(next(keys), w_, out_c, 1, w_s, out_s),
                "downsample": (_init_conv_bn(next(keys), in_c, out_c, 1, in_s, out_s)
                               if (s != 1 or in_c != out_c) else None),
            }
            in_c, in_s = out_c, out_s
            blocks.append(blk)
        stages.append(blocks)
    params["stages"] = stages
    kw_, kb = jax.random.split(next(keys))
    e_s = _round_up(embed_size, LANE)
    w_e = jax.random.normal(kw_, (in_c, embed_size), jnp.float32) / jnp.sqrt(in_c)
    b_e = 0.01 * jax.random.normal(kb, (embed_size,), jnp.float32)
    params["embed"] = (
        _pad_axis(_pad_axis(w_e, in_s, 0), e_s, 1).astype(jnp.bfloat16),
        _pad_axis(b_e, e_s, 0),
    )
    params["embed_size"] = embed_size
    return params


# ---------------------------------------------------------------------------
# Forward pass (matches EncoderCNN.forward semantics)
# ---------------------------------------------------------------------------
def bottleneck(x, blk):
    s = blk["stride"]
    identity = x
    out = conv_bn(x, *blk["conv1"], None, k=1, stride=1, pad=0, relu=True)
    out = conv_bn(out, *blk["conv2"], None, k=3, stride=s, pad=1, relu=True)
    if blk["downsample"] is not None:
        identity = conv_bn(x, *blk["downsample"], None,
                           k=1, stride=s, pad=0, relu=False)
    # bn3 + residual add + ReLU fused in the Pallas matmul epilogue
    out = conv_bn(out, *blk["conv3"], identity, k=1, stride=1, pad=0, relu=True)
    return out


def encoder_cnn_forward(params, images_nchw):
    """images: (B, 3, H, W) float32, NCHW like PyTorch.  Returns (B, embed)."""
    x = jnp.transpose(images_nchw, (0, 2, 3, 1)).astype(jnp.bfloat16)  # NHWC
    x = conv_bn(x, *params["stem"], None, k=7, stride=2, pad=3, relu=True)
    x = maxpool_3x3_s2(x)
    for stage in params["stages"]:
        for blk in stage:
            x = bottleneck(x, blk)
    w, b = params["embed"]
    feats = avgpool_embed(x, w, b)          # avgpool -> flatten -> embed, fused
    return feats[:, :params["embed_size"]]


if __name__ == "__main__":
    key = jax.random.PRNGKey(0)
    pkey, xkey = jax.random.split(key)
    embed_size = 32
    params = make_params(pkey, embed_size=embed_size)
    images = jax.random.normal(xkey, (2, 3, 64, 64), jnp.float32)  # NCHW
    feats = jax.block_until_ready(encoder_cnn_forward(params, images))
    assert feats.shape == (2, embed_size) and feats.dtype == jnp.float32
    assert bool(jnp.all(jnp.isfinite(feats)))
    print("KERNEL_OK")
</pallas_src>

<mosaic_0001>
module attributes {stable_mosaic.version = 11 : i64} {
  func.func @_mm_kernel(%arg0: i32, %arg1: i32, %arg2: i32, %arg3: memref<256x256xbf16, #tpu.memory_space<vmem>>, %arg4: memref<256x128xbf16, #tpu.memory_space<vmem>>, %arg5: memref<1x128xf32, #tpu.memory_space<vmem>>, %arg6: memref<256x128xbf16, #tpu.memory_space<vmem>>, %arg7: memref<256x128xf32, #tpu.memory_space<vmem>>) attributes {dimension_semantics = [#tpu.dimension_semantics<parallel>, #tpu.dimension_semantics<parallel>, #tpu.dimension_semantics<arbitrary>], iteration_bounds = array<i64: 8, 1, 1>, scalar_prefetch = 0 : i64, scratch_operands = 1 : i64, tpu.core_type = #tpu.core_type<tc>, window_params = [{transform_indices = @transform_0, window_bounds = array<i64: 256, 256>}, {transform_indices = @transform_1, window_bounds = array<i64: 256, 128>}, {transform_indices = @transform_2, window_bounds = array<i64: 1, 128>}, {transform_indices = @transform_3, window_bounds = array<i64: 256, 128>}]} {
    %c0_i32 = arith.constant 0 : i32
    %0 = arith.cmpi eq, %arg2, %c0_i32 : i32
    %1 = arith.extui %0 : i1 to i32
    %c0_i32_0 = arith.constant 0 : i32
    %2 = arith.cmpi ne, %1, %c0_i32_0 : i32
    scf.if %2 {
      %cst_10 = arith.constant 0.000000e+00 : f32
      %12 = vector.broadcast %cst_10 : f32 to vector<256x128xf32>
      %c0_11 = arith.constant 0 : index
      %c0_12 = arith.constant 0 : index
      %13 = vector.load %arg7[%c0_11, %c0_12] : memref<256x128xf32, #tpu.memory_space<vmem>>, vector<256x128xf32>
      tpu.vector_store %arg7[%c0_11, %c0_12], %12 {strides = array<i32>} : memref<256x128xf32, #tpu.memory_space<vmem>>, vector<256x128xf32>,
    } else {
    }
    %c0 = arith.constant 0 : index
    %c0_1 = arith.constant 0 : index
    %3 = vector.load %arg7[%c0, %c0_1] : memref<256x128xf32, #tpu.memory_space<vmem>>, vector<256x128xf32>
    %c0_2 = arith.constant 0 : index
    %c0_3 = arith.constant 0 : index
    %4 = vector.load %arg3[%c0_2, %c0_3] : memref<256x256xbf16, #tpu.memory_space<vmem>>, vector<256x256xbf16>
    %c0_4 = arith.constant 0 : index
    %c0_5 = arith.constant 0 : index
    %5 = vector.load %arg4[%c0_4, %c0_5] : memref<256x128xbf16, #tpu.memory_space<vmem>>, vector<256x128xbf16>
    %cst = arith.constant dense<0.000000e+00> : vector<256x128xf32>
    %6 = tpu.matmul %4, %5, %cst {dimension_numbers = #tpu.dot_dimension_numbers<[1], [0], [0], [1], [0, 0, 1, 1], [], []>} : vector<256x256xbf16>, vector<256x128xbf16>, vector<256x128xf32> -> vector<256x128xf32>
    %7 = arith.addf %3, %6 : vector<256x128xf32>
    %c0_6 = arith.constant 0 : index
    %c0_7 = arith.constant 0 : index
    %8 = vector.load %arg7[%c0_6, %c0_7] : memref<256x128xf32, #tpu.memory_space<vmem>>, vector<256x128xf32>
    tpu.vector_store %arg7[%c0_6, %c0_7], %7 {strides = array<i32>} : memref<256x128xf32, #tpu.memory_space<vmem>>, vector<256x128xf32>,
    %c0_i32_8 = arith.constant 0 : i32
    %9 = arith.cmpi eq, %arg2, %c0_i32_8 : i32
    %10 = arith.extui %9 : i1 to i32
    %c0_i32_9 = arith.constant 0 : i32
    %11 = arith.cmpi ne, %10, %c0_i32_9 : i32
    scf.if %11 {
      %c0_10 = arith.constant 0 : index
      %c0_11 = arith.constant 0 : index
      %12 = vector.load %arg7[%c0_10, %c0_11] : memref<256x128xf32, #tpu.memory_space<vmem>>, vector<256x128xf32>
      %c0_12 = arith.constant 0 : index
      %c0_13 = arith.constant 0 : index
      %13 = vector.load %arg5[%c0_12, %c0_13] : memref<1x128xf32, #tpu.memory_space<vmem>>, vector<1x128xf32>
      %14 = vector.broadcast %13 : vector<1x128xf32> to vector<256x128xf32>
      %15 = arith.addf %12, %14 : vector<256x128xf32>
      %cst_14 = arith.constant 0.000000e+00 : f32
      %16 = vector.broadcast %cst_14 : f32 to vector<256x128xf32>
      %17 = arith.maximumf %15, %16 : vector<256x128xf32>
      %18 = arith.truncf %17 : vector<256x128xf32> to vector<256x128xbf16>
      %c0_15 = arith.constant 0 : index
      %c0_16 = arith.constant 0 : index
      %19 = vector.load %arg6[%c0_15, %c0_16] : memref<256x128xbf16, #tpu.memory_space<vmem>>, vector<256x128xbf16>
      tpu.vector_store %arg6[%c0_15, %c0_16], %18 {strides = array<i32>} : memref<256x128xbf16, #tpu.memory_space<vmem>>, vector<256x128xbf16>,
    } else {
    }
    return
  }
  func.func @transform_0(%arg0: i32, %arg1: i32, %arg2: i32) -> (i32, i32) {
    %c0_i32 = arith.constant 0 : i32
    return %arg0, %arg2 : i32, i32
  }
  func.func @transform_1(%arg0: i32, %arg1: i32, %arg2: i32) -> (i32, i32) {
    %c0_i32 = arith.constant 0 : i32
    return %arg2, %arg1 : i32, i32
  }
  func.func @transform_2(%arg0: i32, %arg1: i32, %arg2: i32) -> (i32, i32) {
    %c0_i32 = arith.constant 0 : i32
    %c0_i32_0 = arith.constant 0 : i32
    return %c0_i32, %arg1 : i32, i32
  }
  func.func @transform_3(%arg0: i32, %arg1: i32, %arg2: i32) -> (i32, i32) {
    %c0_i32 = arith.constant 0 : i32
    return %arg0, %arg1 : i32, i32
  }
}

</mosaic_0001>

<bundles_post_ra>
// kernel: conv_bn.2
= control target key start
LH: loop header
LB: loop body
LE: loop exit
PB: predicated region body
PF: predicated region fallthrough
CT: control target
= control target key end

     0   :  { %s3801_s0 = inlined_call_operand.vmem [shape: bf16[256,128], index: 0, kind: input, shape index: {}]   ;;  %s3802_s1 = inlined_call_operand.vmem [shape: f32[1,128], index: 1, kind: input, shape index: {}]   ;;  %s3803_s2 = inlined_call_operand.vmem [shape: bf16[2048,147], index: 2, kind: input, shape index: {}]   ;;  %s3804_s3 = inlined_call_operand.<no memory space> [shape: bf16[], index: 3, kind: input, shape index: {}]   ;;  %s3805_s4 = inlined_call_operand.hbm [shape: bf16[2048,128], index: 4, kind: output, shape index: {}]  }
   0x1   :  { %v9_v0 = vstv %s3804_s3 }
   0x2   :  { %v3430_v1 = vunpack.i.l.bf16 %v9_v0 }
   0x3   :  { %14 = vsyncpa [#allocation9], 0 }
   0x4   :  { %16 = vsyncpa [#allocation9 + $0x1], 0  ;;  %s3432_s17 = smov 0   ;;  %s3434_s18 = smov 0  }
   0x5   :  { %s3436_s19 = smov 0   ;;  %s3438_s20 = smov 0  }
   0x6   :  { %s3440_s21 = smov 0   ;;  %s3442_s22 = smov 0  }
   0x7 LB: > { %s2830_s3 = sadd.s32 4294967295, %s3398_s22   ;;  %s2831_s23 = sadd.s32 4294967294, %s3398_s22   ;;  %s3398_s22 = sphi %s3442_s22, %s22_s22   ;;  %s3394_s21 = sphi %s3440_s21, %s3812_s21   ;;  %s3390_s20 = sphi %s3438_s20, %s3811_s20   ;;  %s3386_s19 = sphi %s3436_s19, %s3810_s19   ;;  %s3382_s18 = sphi %s3434_s18, %s3809_s18   ;;  %s3378_s17 = sphi %s3432_s17, %s3808_s17  }
   0x8   : > { %s41_s24 = sadd.s32 1, %s3394_s21  ;;  %s132_s25 = sadd.s32 1, %s3386_s19 }
   0x9   : > { %p43_p0 = scmp.ge.s32.totalorder %s41_s24, 8  ;;  %p142_p1 = scmp.ne.s32.totalorder %s3386_s19, %s3382_s18 }
   0xa   : > { %p143_p2 = scmp.eq.s32.totalorder %s2830_s3, 7  ;;  %p148_p3 = scmp.ne.s32.totalorder %s3382_s18, %s3378_s17 }
   0xb   : > { %s3814_s24 = smov (%p43_p0, %s41_s24), 0  ;;  %p149_p5 = scmp.eq.s32.totalorder %s2831_s23, 7 }
   0xc   : > { %p3472_p4 = por %p143_p2, %p142_p1  ;;  %s127_s27 = ssub.s32 %s3394_s21, %s3814_s24 }
   0xd   : > { %p2836_p6 = scmp.ge.s32.totalorder %s3398_s22, 1  ;;  %p130_p7 = scmp.eq.s32.totalorder %s127_s27, 0 }
   0xe   : > { %p3479_p8 = por %p149_p5, %p148_p3  ;;  %p204_p9 = scmp.lt.s32.totalorder %s3398_s22, 9 }
   0xf   : > { %s3485_s29 = scalar_select %p130_p7, %s3386_s19, %s132_s25  }
  0x10   : > { %p205_p10 = pnand %p2836_p6, %p204_p9 }
  0x12   : > { %208 = sbr.rel (%p205_p10) target bundleno = 320 (0x140), region = 32 }
  0x17   : > { %v3141_v2 = vld [vmem:[%s3801_s0 + $0x38] sm:$0xff]  ;;  %s2838_s8 = sshll.u32 %s3390_s20, 5  ;;  %v313_v4 = vlaneseq  ;;  %v3140_v5 = vld [vmem:[%s3801_s0 + $0x30] sm:$0xff]  ;;  %v3139_v9 = vld [vmem:[%s3801_s0 + $0x28] sm:$0xff]  ;;  %s243_s9 = sand.u32 1, %s3382_s18  }
  0x18   : > { %v3149_v3 = vld [vmem:[%s3801_s0 + $0x78] sm:$0xff]  ;;  %p250_p11 = scmp.lt.s32.totalorder %s2838_s8, 255  ;;  %2293 = vmatpush.bf16.msra.mxu0 %v3141_v2  ;;  %3246 = vmatpush.bf16.msra.mxu2 %v3141_v2  ;;  %v3148_v7 = vld [vmem:[%s3801_s0 + $0x70] sm:$0xff]  ;;  %v3147_v10 = vld [vmem:[%s3801_s0 + $0x68] sm:$0xff]  ;;  %s2837_s10 = sshll.u32 %s243_s9, 7 }
  0x19   : > { %v314_v6 = vand.u32 127, %v313_v4  ;;  %2382 = vmatpush.bf16.msra.mxu1 %v3149_v3  ;;  %3254 = vmatpush.bf16.msra.mxu3 %v3149_v3  ;;  %v3138_v14 = vld [vmem:[%s3801_s0 + $0x20] sm:$0xff]  ;;  %v3137_v28 = vld [vmem:[%s3801_s0 + $0x18] sm:$0xff]  ;;  %v3136_v50 = vld [vmem:[%s3801_s0 + $0x10] sm:$0xff]  ;;  %s3715_s11 = scalar_lea.vmem [#allocation8], %s2837_s10  ;;  %s3150_s12 = sshll.u32 %s3390_s20, 7 }
  0x1a   : > { %s3816_s8 = smov (!%p250_p11, %s2838_s8), 255  ;;  %v3146_v24 = vld [vmem:[%s3801_s0 + $0x60] sm:$0xff]  ;;  %v3145_v36 = vld [vmem:[%s3801_s0 + $0x58] sm:$0xff]  ;;  %v3144_v53 = vld [vmem:[%s3801_s0 + $0x50] sm:$0xff]  ;;  %s2715_s15 = scalar_lea.hbm %s3805_s4, %s3150_s12 }
  0x1b   : > { %v3500_v8 = vadd.s32 128, %v314_v6  ;;  %s3101_s13 = sshll.u32 %s3816_s8, 3  ;;  %v3135_v58 = vld [vmem:[%s3801_s0 + $0x8] sm:$0xff]  ;;  %v3134_v0 = vld [vmem:[%s3801_s0] sm:$0xff]  ;;  %s2716_s16 = sshll.u32 %s3715_s11, 4  ;;  %s2717_s16 = int_to_ptr.vmem [resolvable:$true] %s2716_s16 }
  0x1c   : > { %2294 = vmatpush.bf16.msra.mxu0 %v3140_v5  ;;  %3247 = vmatpush.bf16.msra.mxu2 %v3140_v5  ;;  %s3511_s27 = scalar_lea.vmem %s3803_s2, %s3101_s13  ;;  %v3143_v59 = vld [vmem:[%s3801_s0 + $0x48] sm:$0xff]  ;;  %v3142_v5 = vld [vmem:[%s3801_s0 + $0x40] sm:$0xff]  ;;  %s2718_s20 = sshll.u32 %s2715_s15, 4  ;;  %s2719_s20 = int_to_ptr.hbm [resolvable:$true] %s2718_s20 }
  0x1d   : > { %vm317_vm0 = vcmp.lt.s32.totalorder %v3500_v8, 147  ;;  %2383 = vmatpush.bf16.msra.mxu1 %v3148_v7  ;;  %3255 = vmatpush.bf16.msra.mxu3 %v3148_v7  ;;  %v275_v11 = vld [vmem:[%s3511_s27] sm:$0xf]  ;;  %v2842_v12 = vld [vmem:[%s3511_s27 + $0x8] sm:$0xf]  ;;  %s2703_s3 = scalar_lea.sflag [#allocation9], %s243_s9 }
  0x1e   : > { %v2872_v13 = vld [vmem:[%s3511_s27 + $0x80] sm:$0xf]  ;;  %288 = vst [vmem:[#allocation10] sm:$0xf] %v275_v11  ;;  %v2874_v15 = vld [vmem:[%s3511_s27 + $0x88] sm:$0xf] }
  0x1f   : > { %v2841_v16 = vld [vmem:[%s3511_s27 + $0x4] sm:$0xf]  ;;  %339 = vst [vmem:[#allocation10 + $0x8] sm:$0xf] %v2842_v12  ;;  %v2843_v18 = vld [vmem:[%s3511_s27 + $0xc] sm:$0xf] }
  0x20   : > { %v304_v17 = vunpack.c.l.bf16 %v2841_v16  ;;  %v2873_v19 = vld [vmem:[%s3511_s27 + $0x84] sm:$0xf]  ;;  %2295 = vmatpush.bf16.msra.mxu0 %v3139_v9  ;;  %3248 = vmatpush.bf16.msra.mxu2 %v3139_v9  ;;  %1104 = vst [vmem:[#allocation10 + $0x80] sm:$0xf] %v2872_v13  ;;  %v355_v20 = vunpack.c.l.bf16 %v2843_v18  ;;  %v2875_v22 = vld [vmem:[%s3511_s27 + $0x8c] sm:$0xf] }
  0x21   : > { %v1120_v21 = vunpack.c.l.bf16 %v2873_v19  ;;  %v2844_v23 = vld [vmem:[%s3511_s27 + $0x10] sm:$0xf]  ;;  %2384 = vmatpush.bf16.msra.mxu1 %v3147_v10  ;;  %3256 = vmatpush.bf16.msra.mxu3 %v3147_v10  ;;  %1155 = vst [vmem:[#allocation10 + $0x88] sm:$0xf] %v2874_v15  ;;  %v1171_v26 = vunpack.c.l.bf16 %v2875_v22  ;;  %v2846_v27 = vld [vmem:[%s3511_s27 + $0x18] sm:$0xf] }
  0x22   : > { %v318_v25 = vsel %vm317_vm0, %v304_v17, %v3430_v1  ;;  %v369_v30 = vsel %vm317_vm0, %v355_v20, %v3430_v1  ;;  %390 = vst [vmem:[#allocation10 + $0x10] sm:$0xf] %v2844_v23  ;;  %v2845_v35 = vld [vmem:[%s3511_s27 + $0x14] sm:$0xf]  ;;  %v2847_v39 = vld [vmem:[%s3511_s27 + $0x1c] sm:$0xf] }
  0x23   : > { %v320_v29 = vpack.c.bf16 0.0, %v318_v25  ;;  %v1134_v31 = vsel %vm317_vm0, %v1120_v21, %v3430_v1  ;;  %v371_v32 = vpack.c.bf16 0.0, %v369_v30  ;;  %v1185_v34 = vsel %vm317_vm0, %v1171_v26, %v3430_v1  ;;  %441 = vst [vmem:[#allocation10 + $0x18] sm:$0xf] %v2846_v27  ;;  %v2876_v40 = vld [vmem:[%s3511_s27 + $0x90] sm:$0xf] }
  0x24   : > { %v1136_v33 = vpack.c.bf16 0.0, %v1134_v31  ;;  %2296 = vmatpush.bf16.msra.mxu0 %v3138_v14  ;;  %3249 = vmatpush.bf16.msra.mxu2 %v3138_v14  ;;  %v1187_v37 = vpack.c.bf16 0.0, %v1185_v34  ;;  %v406_v38 = vunpack.c.l.bf16 %v2845_v35  ;;  %v457_v41 = vunpack.c.l.bf16 %v2847_v39  ;;  %v2877_v42 = vld [vmem:[%s3511_s27 + $0x94] sm:$0xf]  ;;  %v2878_v43 = vld [vmem:[%s3511_s27 + $0x98] sm:$0xf] }
  0x25   : > { %323 = vst [vmem:[#allocation10 + $0x4] sm:$0xf] %v320_v29  ;;  %2385 = vmatpush.bf16.msra.mxu1 %v3146_v24  ;;  %3257 = vmatpush.bf16.msra.mxu3 %v3146_v24  ;;  %v1222_v45 = vunpack.c.l.bf16 %v2877_v42  ;;  %v2879_v46 = vld [vmem:[%s3511_s27 + $0x9c] sm:$0xf]  ;;  %v2848_v57 = vld [vmem:[%s3511_s27 + $0x20] sm:$0xf] }
  0x26   : > { %374 = vst [vmem:[#allocation10 + $0xc] sm:$0xf] %v371_v32  ;;  %v420_v44 = vsel %vm317_vm0, %v406_v38, %v3430_v1  ;;  %v471_v48 = vsel %vm317_vm0, %v457_v41, %v3430_v1  ;;  %v1273_v49 = vunpack.c.l.bf16 %v2879_v46  ;;  %v2850_v60 = vld [vmem:[%s3511_s27 + $0x28] sm:$0xf]  ;;  %v2906_v61 = vld [vmem:[#allocation10] sm:$0xf] }
  0x27   : > { %1139 = vst [vmem:[#allocation10 + $0x84] sm:$0xf] %v1136_v33  ;;  %v422_v47 = vpack.c.bf16 0.0, %v420_v44  ;;  %v473_v51 = vpack.c.bf16 0.0, %v471_v48  ;;  %v1236_v52 = vsel %vm317_vm0, %v1222_v45, %v3430_v1  ;;  %v3103_v62 = vld [vmem:[#allocation10 + $0x4] sm:$0xf0] }
  0x28   : > { %1190 = vst [vmem:[#allocation10 + $0x8c] sm:$0xf] %v1187_v37  ;;  %2297 = vmatpush.bf16.msra.mxu0 %v3137_v28  ;;  %3250 = vmatpush.bf16.msra.mxu2 %v3137_v28  ;;  %v1238_v54 = vpack.c.bf16 0.0, %v1236_v52  ;;  %v1287_v55 = vsel %vm317_vm0, %v1273_v49, %v3430_v1  ;;  %v2880_v63 = vld [vmem:[%s3511_s27 + $0xa0] sm:$0xf]  ;;  %v2907_v16 = vor.u32 %v3103_v62, %v2906_v61  ;;  %s3334_s23 = sshra.s32 %s2719_s20, 4  ;;  %s3335_s23 = int_to_ptr.hbm [resolvable:$true] %s3334_s23 }
  0x29   : > { %1206 = vst [vmem:[#allocation10 + $0x90] sm:$0xf] %v2876_v40  ;;  %2386 = vmatpush.bf16.msra.mxu1 %v3145_v36  ;;  %3258 = vmatpush.bf16.msra.mxu3 %v3145_v36  ;;  %v1289_v56 = vpack.c.bf16 0.0, %v1287_v55  ;;  %v2970_v2 = vld [vmem:[#allocation10 + $0x80] sm:$0xf]  ;;  %s3336_s25 = scalar_lea.hbm %s3335_s23, 128  ;;  %p3341_p1 = scmp.lt.s32.totalorder %s3335_s23, %s3805_s4 }
  0x2a   : > { %1257 = vst [vmem:[#allocation10 + $0x98] sm:$0xf] %v2878_v43  ;;  %v3119_v3 = vld [vmem:[#allocation10 + $0x84] sm:$0xf0]  ;;  %v2849_v9 = vld [vmem:[%s3511_s27 + $0x24] sm:$0xf]  ;;  %p3337_p12 = scmp.ne.s32.totalorder %s3335_s23, %s3336_s25 }
  0x2b   : > { %425 = vst [vmem:[#allocation10 + $0x14] sm:$0xf] %v422_v47  ;;  %v2882_v4 = vld [vmem:[%s3511_s27 + $0xa8] sm:$0xf]  ;;  %v508_v11 = vunpack.c.l.bf16 %v2849_v9  ;;  %v2851_v12 = vld [vmem:[%s3511_s27 + $0x2c] sm:$0xf]  ;;  %v2971_v20 = vor.u32 %v3119_v3, %v2970_v2 }
  0x2c   : > { %476 = vst [vmem:[#allocation10 + $0x1c] sm:$0xf] %v473_v51  ;;  %2298 = vmatpush.bf16.msra.mxu0 %v3136_v50  ;;  %3251 = vmatpush.bf16.msra.mxu2 %v3136_v50  ;;  %v3102_v6 = vld [vmem:[#allocation10 + $0x4] sm:$0xf]  ;;  %v559_v14 = vunpack.c.l.bf16 %v2851_v12  ;;  %v2883_v19 = vld [vmem:[%s3511_s27 + $0xac] sm:$0xf]  ;;  %p3338_p13 = pnand %p3337_p12, %p3472_p4 }
  0x2d   : > { %1241 = vst [vmem:[#allocation10 + $0x94] sm:$0xf] %v1238_v54  ;;  %2387 = vmatpush.bf16.msra.mxu1 %v3144_v53  ;;  %3259 = vmatpush.bf16.msra.mxu3 %v3144_v53  ;;  %v2908_v7 = vld [vmem:[#allocation10 + $0x8] sm:$0xf0]  ;;  %v2881_v15 = vld [vmem:[%s3511_s27 + $0xa4] sm:$0xf]  ;;  %v522_v17 = vsel %vm317_vm0, %v508_v11, %v3430_v1  ;;  %v1375_v23 = vunpack.c.l.bf16 %v2883_v19 }
  0x2e   : > { %1292 = vst [vmem:[#allocation10 + $0x9c] sm:$0xf] %v1289_v56  ;;  %v3118_v10 = vld [vmem:[#allocation10 + $0x84] sm:$0xf]  ;;  %v1324_v18 = vunpack.c.l.bf16 %v2881_v15  ;;  %v524_v21 = vpack.c.bf16 0.0, %v522_v17  ;;  %v573_v22 = vsel %vm317_vm0, %v559_v14, %v3430_v1  ;;  %v2911_v24 = vor.u32 %v3102_v6, %v2908_v7  ;;  %p3339_p0 = pneg %p3338_p13  ;;  %s3340_s6 = scalar_lea.hbm %s3805_s4, 1024 }
  0x2f   : > { %492 = vst [vmem:[#allocation10 + $0x20] sm:$0xf] %v2848_v57  ;;  %v2972_v13 = vld [vmem:[#allocation10 + $0x88] sm:$0xf0]  ;;  %v575_v26 = vpack.c.bf16 0.0, %v573_v22  ;;  %v1389_v29 = vsel %vm317_vm0, %v1375_v23, %v3430_v1  ;;  %p3342_p2 = scmp.lt.s32.totalorder %s3340_s6, %s3336_s25 }
  0x30   : > { %543 = vst [vmem:[#allocation10 + $0x28] sm:$0xf] %v2850_v60  ;;  %2299 = vmatpush.bf16.msra.mxu0 %v3135_v58  ;;  %3252 = vmatpush.bf16.msra.mxu2 %v3135_v58  ;;  %v2975_v25 = vor.u32 %v3118_v10, %v2972_v13  ;;  %v1338_v27 = vsel %vm317_vm0, %v1324_v18, %v3430_v1  ;;  %v1391_v30 = vpack.c.bf16 0.0, %v1389_v29  ;;  %v2852_v31 = vld [vmem:[%s3511_s27 + $0x30] sm:$0xf] }
  0x31   : > { %1308 = vst [vmem:[#allocation10 + $0xa0] sm:$0xf] %v2880_v63  ;;  %2388 = vmatpush.bf16.msra.mxu1 %v3143_v59  ;;  %3260 = vmatpush.bf16.msra.mxu3 %v3143_v59  ;;  %v1340_v28 = vpack.c.bf16 0.0, %v1338_v27  ;;  %v2854_v32 = vld [vmem:[%s3511_s27 + $0x38] sm:$0xf]  ;;  %p3343_p3 = por %p3342_p2, %p3341_p1 }
  0x32   : > { %1359 = vst [vmem:[#allocation10 + $0xa8] sm:$0xf] %v2882_v4  ;;  %v2853_v33 = vld [vmem:[%s3511_s27 + $0x34] sm:$0xf]  ;;  %v2855_v35 = vld [vmem:[%s3511_s27 + $0x3c] sm:$0xf] }
  0x33   : > { %527 = vst [vmem:[#allocation10 + $0x24] sm:$0xf] %v524_v21  ;;  %v610_v34 = vunpack.c.l.bf16 %v2853_v33  ;;  %v2885_v36 = vld [vmem:[%s3511_s27 + $0xb4] sm:$0xf]  ;;  %v661_v37 = vunpack.c.l.bf16 %v2855_v35  ;;  %v2887_v39 = vld [vmem:[%s3511_s27 + $0xbc] sm:$0xf]  ;;  %p3344_p5 = pnand %p3343_p3, %p3339_p0 }
  0x34   : > { %2300 = vmatpush.bf16.msra.mxu0 %v3134_v0  ;;  %3253 = vmatpush.bf16.msra.mxu2 %v3134_v0  ;;  %578 = vst [vmem:[#allocation10 + $0x2c] sm:$0xf] %v575_v26  ;;  %v1426_v38 = vunpack.c.l.bf16 %v2885_v36  ;;  %v1477_v41 = vunpack.c.l.bf16 %v2887_v39  ;;  %v2884_v42 = vld [vmem:[%s3511_s27 + $0xb0] sm:$0xf]  ;;  %v2886_v43 = vld [vmem:[%s3511_s27 + $0xb8] sm:$0xf] }
  0x35   : > { %2389 = vmatpush.bf16.msra.mxu1 %v3142_v5  ;;  %3261 = vmatpush.bf16.msra.mxu3 %v3142_v5  ;;  %1343 = vst [vmem:[#allocation10 + $0xa4] sm:$0xf] %v1340_v28  ;;  %v624_v40 = vsel %vm317_vm0, %v610_v34, %v3430_v1  ;;  %v675_v44 = vsel %vm317_vm0, %v661_v37, %v3430_v1  ;;  %v2914_v46 = vld [vmem:[#allocation10 + $0x10] sm:$0xf]  ;;  %v3105_v47 = vld [vmem:[#allocation10 + $0x14] sm:$0xf0] }
  0x36   : > { %1394 = vst [vmem:[#allocation10 + $0xac] sm:$0xf] %v1391_v30  ;;  %v1440_v45 = vsel %vm317_vm0, %v1426_v38, %v3430_v1  ;;  %v2978_v48 = vld [vmem:[#allocation10 + $0x90] sm:$0xf]  ;;  %v626_v49 = vpack.c.bf16 0.0, %v624_v40  ;;  %v677_v50 = vpack.c.bf16 0.0, %v675_v44  ;;  %v1491_v51 = vsel %vm317_vm0, %v1477_v41, %v3430_v1 }
  0x37   : > { %2301 = vmatmul.bf16.vlgmr.msra.gmra.mxu0 %v2907_v16  ;;  %2341 = vmatmul.bf16.vlgmr.msra.gmra.mxu2 %v2971_v20  ;;  %594 = vst [vmem:[#allocation10 + $0x30] sm:$0xf] %v2852_v31  ;;  %v3121_v52 = vld [vmem:[#allocation10 + $0x94] sm:$0xf0]  ;;  %v1442_v53 = vpack.c.bf16 0.0, %v1440_v45  ;;  %v1493_v54 = vpack.c.bf16 0.0, %v1491_v51  ;;  %v2915_v59 = vor.u32 %v3105_v47, %v2914_v46 }
  0x38   : > { %2390 = vmatmul.bf16.vlgmr.msra.gmra.mxu1 %v2911_v24  ;;  %2430 = vmatmul.bf16.vlgmr.msra.gmra.mxu3 %v2975_v25  ;;  %645 = vst [vmem:[#allocation10 + $0x38] sm:$0xf] %v2854_v32  ;;  %v3104_v55 = vld [vmem:[#allocation10 + $0x14] sm:$0xf]  ;;  %v2916_v56 = vld [vmem:[#allocation10 + $0x18] sm:$0xf0]  ;;  %v2979_v60 = vor.u32 %v3121_v52, %v2978_v48 }
  0x39   : > { %1410 = vst [vmem:[#allocation10 + $0xb0] sm:$0xf] %v2884_v42  ;;  %v3120_v57 = vld [vmem:[#allocation10 + $0x94] sm:$0xf]  ;;  %v2980_v58 = vld [vmem:[#allocation10 + $0x98] sm:$0xf0]  ;;  %v2919_v61 = vor.u32 %v3104_v55, %v2916_v56 }
  0x3a   : > { %1461 = vst [vmem:[#allocation10 + $0xb8] sm:$0xf] %v2886_v43  ;;  %v2983_v62 = vor.u32 %v3120_v57, %v2980_v58  ;;  %v2856_v63 = vld [vmem:[%s3511_s27 + $0x40] sm:$0xf]  ;;  %v2858_v0 = vld [vmem:[%s3511_s27 + $0x48] sm:$0xf] }
  0x3b   : > { %629 = vst [vmem:[#allocation10 + $0x34] sm:$0xf] %v626_v49  ;;  %v2857_v2 = vld [vmem:[%s3511_s27 + $0x44] sm:$0xf]  ;;  %v2859_v4 = vld [vmem:[%s3511_s27 + $0x4c] sm:$0xf] }
  0x3c   : > { %680 = vst [vmem:[#allocation10 + $0x3c] sm:$0xf] %v677_v50  ;;  %v712_v3 = vunpack.c.l.bf16 %v2857_v2  ;;  %v763_v5 = vunpack.c.l.bf16 %v2859_v4  ;;  %v2889_v6 = vld [vmem:[%s3511_s27 + $0xc4] sm:$0xf]  ;;  %v2891_v7 = vld [vmem:[%s3511_s27 + $0xcc] sm:$0xf] }
  0x3d   : > { %1445 = vst [vmem:[#allocation10 + $0xb4] sm:$0xf] %v1442_v53  ;;  %v1528_v10 = vunpack.c.l.bf16 %v2889_v6  ;;  %v1579_v11 = vunpack.c.l.bf16 %v2891_v7  ;;  %v2888_v12 = vld [vmem:[%s3511_s27 + $0xc0] sm:$0xf]  ;;  %v2890_v13 = vld [vmem:[%s3511_s27 + $0xc8] sm:$0xf] }
  0x3e   : > { %1496 = vst [vmem:[#allocation10 + $0xbc] sm:$0xf] %v1493_v54  ;;  %v726_v9 = vsel %vm317_vm0, %v712_v3, %v3430_v1  ;;  %v777_v15 = vsel %vm317_vm0, %v763_v5, %v3430_v1  ;;  %v2922_v16 = vld [vmem:[#allocation10 + $0x20] sm:$0xf]  ;;  %v3107_v17 = vld [vmem:[#allocation10 + $0x24] sm:$0xf0] }
  0x3f   : > { %696 = vst [vmem:[#allocation10 + $0x40] sm:$0xf] %v2856_v63  ;;  %v728_v14 = vpack.c.bf16 0.0, %v726_v9  ;;  %v2986_v18 = vld [vmem:[#allocation10 + $0xa0] sm:$0xf]  ;;  %v779_v19 = vpack.c.bf16 0.0, %v777_v15  ;;  %v1542_v20 = vsel %vm317_vm0, %v1528_v10, %v3430_v1  ;;  %v1593_v21 = vsel %vm317_vm0, %v1579_v11, %v3430_v1 }
  0x40   : > { %747 = vst [vmem:[#allocation10 + $0x48] sm:$0xf] %v2858_v0  ;;  %v3123_v22 = vld [vmem:[#allocation10 + $0xa4] sm:$0xf0]  ;;  %v1544_v23 = vpack.c.bf16 0.0, %v1542_v20  ;;  %v1595_v24 = vpack.c.bf16 0.0, %v1593_v21  ;;  %v2923_v29 = vor.u32 %v3107_v17, %v2922_v16 }
  0x41   : > { %1512 = vst [vmem:[#allocation10 + $0xc0] sm:$0xf] %v2888_v12  ;;  %v3106_v25 = vld [vmem:[#allocation10 + $0x24] sm:$0xf]  ;;  %v2924_v26 = vld [vmem:[#allocation10 + $0x28] sm:$0xf0]  ;;  %v2987_v30 = vor.u32 %v3123_v22, %v2986_v18 }
  0x42   : > { %1563 = vst [vmem:[#allocation10 + $0xc8] sm:$0xf] %v2890_v13  ;;  %v3122_v27 = vld [vmem:[#allocation10 + $0xa4] sm:$0xf]  ;;  %v2988_v28 = vld [vmem:[#allocation10 + $0xa8] sm:$0xf0]  ;;  %v2927_v31 = vor.u32 %v3106_v25, %v2924_v26 }
  0x43   : > { %731 = vst [vmem:[#allocation10 + $0x44] sm:$0xf] %v728_v14  ;;  %v2991_v32 = vor.u32 %v3122_v27, %v2988_v28  ;;  %v2860_v33 = vld [vmem:[%s3511_s27 + $0x50] sm:$0xf]  ;;  %v2862_v34 = vld [vmem:[%s3511_s27 + $0x58] sm:$0xf] }
  0x44   : > { %782 = vst [vmem:[#allocation10 + $0x4c] sm:$0xf] %v779_v19  ;;  %v2861_v35 = vld [vmem:[%s3511_s27 + $0x54] sm:$0xf]  ;;  %v2863_v37 = vld [vmem:[%s3511_s27 + $0x5c] sm:$0xf] }
  0x45   : > { %1547 = vst [vmem:[#allocation10 + $0xc4] sm:$0xf] %v1544_v23  ;;  %v814_v36 = vunpack.c.l.bf16 %v2861_v35  ;;  %v865_v38 = vunpack.c.l.bf16 %v2863_v37  ;;  %v2893_v39 = vld [vmem:[%s3511_s27 + $0xd4] sm:$0xf]  ;;  %v2895_v40 = vld [vmem:[%s3511_s27 + $0xdc] sm:$0xf] }
  0x46   : > { %1598 = vst [vmem:[#allocation10 + $0xcc] sm:$0xf] %v1595_v24  ;;  %v1630_v42 = vunpack.c.l.bf16 %v2893_v39  ;;  %v1681_v43 = vunpack.c.l.bf16 %v2895_v40  ;;  %v2892_v44 = vld [vmem:[%s3511_s27 + $0xd0] sm:$0xf]  ;;  %v2894_v45 = vld [vmem:[%s3511_s27 + $0xd8] sm:$0xf] }
  0x47   : > { %2306 = vmatmul.bf16.gmra.mxu0 %v2915_v59  ;;  %2346 = vmatmul.bf16.gmra.mxu2 %v2979_v60  ;;  %798 = vst [vmem:[#allocation10 + $0x50] sm:$0xf] %v2860_v33  ;;  %v828_v41 = vsel %vm317_vm0, %v814_v36, %v3430_v1  ;;  %v879_v47 = vsel %vm317_vm0, %v865_v38, %v3430_v1  ;;  %v2930_v48 = vld [vmem:[#allocation10 + $0x30] sm:$0xf]  ;;  %v3109_v49 = vld [vmem:[#allocation10 + $0x34] sm:$0xf0] }
  0x48   : > { %2395 = vmatmul.bf16.gmra.mxu1 %v2919_v61  ;;  %2435 = vmatmul.bf16.gmra.mxu3 %v2983_v62  ;;  %849 = vst [vmem:[#allocation10 + $0x58] sm:$0xf] %v2862_v34  ;;  %v830_v46 = vpack.c.bf16 0.0, %v828_v41  ;;  %v2994_v50 = vld [vmem:[#allocation10 + $0xb0] sm:$0xf]  ;;  %v881_v51 = vpack.c.bf16 0.0, %v879_v47  ;;  %v1644_v52 = vsel %vm317_vm0, %v1630_v42, %v3430_v1  ;;  %v1695_v53 = vsel %vm317_vm0, %v1681_v43, %v3430_v1 }
  0x49   : > { %1614 = vst [vmem:[#allocation10 + $0xd0] sm:$0xf] %v2892_v44  ;;  %v3125_v54 = vld [vmem:[#allocation10 + $0xb4] sm:$0xf0]  ;;  %v1646_v55 = vpack.c.bf16 0.0, %v1644_v52  ;;  %v1697_v56 = vpack.c.bf16 0.0, %v1695_v53  ;;  %v2931_v61 = vor.u32 %v3109_v49, %v2930_v48 }
  0x4a   : > { %1665 = vst [vmem:[#allocation10 + $0xd8] sm:$0xf] %v2894_v45  ;;  %v3108_v57 = vld [vmem:[#allocation10 + $0x34] sm:$0xf]  ;;  %v2932_v58 = vld [vmem:[#allocation10 + $0x38] sm:$0xf0]  ;;  %v2995_v62 = vor.u32 %v3125_v54, %v2994_v50 }
  0x4b   : > { %833 = vst [vmem:[#allocation10 + $0x54] sm:$0xf] %v830_v46  ;;  %v3124_v59 = vld [vmem:[#allocation10 + $0xb4] sm:$0xf]  ;;  %v2996_v60 = vld [vmem:[#allocation10 + $0xb8] sm:$0xf0]  ;;  %v2935_v63 = vor.u32 %v3108_v57, %v2932_v58 }
  0x4c   : > { %884 = vst [vmem:[#allocation10 + $0x5c] sm:$0xf] %v881_v51  ;;  %v2999_v0 = vor.u32 %v3124_v59, %v2996_v60  ;;  %v2864_v2 = vld [vmem:[%s3511_s27 + $0x60] sm:$0xf]  ;;  %v2866_v3 = vld [vmem:[%s3511_s27 + $0x68] sm:$0xf] }
  0x4d   : > { %1649 = vst [vmem:[#allocation10 + $0xd4] sm:$0xf] %v1646_v55  ;;  %v2865_v4 = vld [vmem:[%s3511_s27 + $0x64] sm:$0xf]  ;;  %v2867_v6 = vld [vmem:[%s3511_s27 + $0x6c] sm:$0xf] }
  0x4e   : > { %1700 = vst [vmem:[#allocation10 + $0xdc] sm:$0xf] %v1697_v56  ;;  %v916_v5 = vunpack.c.l.bf16 %v2865_v4  ;;  %v967_v7 = vunpack.c.l.bf16 %v2867_v6  ;;  %v2897_v9 = vld [vmem:[%s3511_s27 + $0xe4] sm:$0xf]  ;;  %v2899_v10 = vld [vmem:[%s3511_s27 + $0xec] sm:$0xf] }
  0x4f   : > { %900 = vst [vmem:[#allocation10 + $0x60] sm:$0xf] %v2864_v2  ;;  %v1732_v12 = vunpack.c.l.bf16 %v2897_v9  ;;  %v1783_v13 = vunpack.c.l.bf16 %v2899_v10  ;;  %v2896_v14 = vld [vmem:[%s3511_s27 + $0xe0] sm:$0xf]  ;;  %v2898_v15 = vld [vmem:[%s3511_s27 + $0xe8] sm:$0xf] }
  0x50   : > { %951 = vst [vmem:[#allocation10 + $0x68] sm:$0xf] %v2866_v3  ;;  %v930_v11 = vsel %vm317_vm0, %v916_v5, %v3430_v1  ;;  %v981_v17 = vsel %vm317_vm0, %v967_v7, %v3430_v1  ;;  %v2938_v18 = vld [vmem:[#allocation10 + $0x40] sm:$0xf]  ;;  %v3111_v19 = vld [vmem:[#allocation10 + $0x44] sm:$0xf0] }
  0x51   : > { %v932_v16 = vpack.c.bf16 0.0, %v930_v11  ;;  %v3002_v20 = vld [vmem:[#allocation10 + $0xc0] sm:$0xf]  ;;  %1716 = vst [vmem:[#allocation10 + $0xe0] sm:$0xf] %v2896_v14  ;;  %v983_v21 = vpack.c.bf16 0.0, %v981_v17  ;;  %v1746_v22 = vsel %vm317_vm0, %v1732_v12, %v3430_v1  ;;  %v1797_v23 = vsel %vm317_vm0, %v1783_v13, %v3430_v1 }
  0x52   : > { %v3127_v24 = vld [vmem:[#allocation10 + $0xc4] sm:$0xf0]  ;;  %1767 = vst [vmem:[#allocation10 + $0xe8] sm:$0xf] %v2898_v15  ;;  %v1748_v25 = vpack.c.bf16 0.0, %v1746_v22  ;;  %v1799_v26 = vpack.c.bf16 0.0, %v1797_v23 }
  0x53   : > { %v3110_v27 = vld [vmem:[#allocation10 + $0x44] sm:$0xf]  ;;  %v2940_v28 = vld [vmem:[#allocation10 + $0x48] sm:$0xf0]  ;;  %935 = vst [vmem:[#allocation10 + $0x64] sm:$0xf] %v932_v16 }
  0x54   : > { %986 = vst [vmem:[#allocation10 + $0x6c] sm:$0xf] %v983_v21  ;;  %v2943_v33 = vor.u32 %v3110_v27, %v2940_v28  ;;  %v2868_v35 = vld [vmem:[%s3511_s27 + $0x70] sm:$0xf]  ;;  %v2870_v36 = vld [vmem:[%s3511_s27 + $0x78] sm:$0xf] }
  0x55   : > { %1751 = vst [vmem:[#allocation10 + $0xe4] sm:$0xf] %v1748_v25  ;;  %v2869_v37 = vld [vmem:[%s3511_s27 + $0x74] sm:$0xf]  ;;  %v2871_v39 = vld [vmem:[%s3511_s27 + $0x7c] sm:$0xf] }
  0x56   : > { %1802 = vst [vmem:[#allocation10 + $0xec] sm:$0xf] %v1799_v26  ;;  %v1018_v38 = vunpack.c.l.bf16 %v2869_v37  ;;  %v1069_v40 = vunpack.c.l.bf16 %v2871_v39  ;;  %v2901_v41 = vld [vmem:[%s3511_s27 + $0xf4] sm:$0xf]  ;;  %v2903_v42 = vld [vmem:[%s3511_s27 + $0xfc] sm:$0xf] }
  0x57   : > { %2311 = vmatmul.bf16.gmra.mxu0 %v2923_v29  ;;  %2351 = vmatmul.bf16.gmra.mxu2 %v2987_v30  ;;  %v3126_v29 = vld [vmem:[#allocation10 + $0xc4] sm:$0xf]  ;;  %v3004_v30 = vld [vmem:[#allocation10 + $0xc8] sm:$0xf0]  ;;  %1002 = vst [vmem:[#allocation10 + $0x70] sm:$0xf] %v2868_v35  ;;  %v1834_v44 = vunpack.c.l.bf16 %v2901_v41  ;;  %v1885_v45 = vunpack.c.l.bf16 %v2903_v42 }
  0x58   : > { %2400 = vmatmul.bf16.gmra.mxu1 %v2927_v31  ;;  %2440 = vmatmul.bf16.gmra.mxu3 %v2991_v32  ;;  %v2939_v31 = vor.u32 %v3111_v19, %v2938_v18  ;;  %v3003_v32 = vor.u32 %v3127_v24, %v3002_v20  ;;  %v3007_v34 = vor.u32 %v3126_v29, %v3004_v30  ;;  %v2900_v46 = vld [vmem:[%s3511_s27 + $0xf0] sm:$0xf]  ;;  %v2902_v47 = vld [vmem:[%s3511_s27 + $0xf8] sm:$0xf]  ;;  %v3112_v59 = vld [vmem:[#allocation10 + $0x54] sm:$0xf] }
  0x59   : > { %1053 = vst [vmem:[#allocation10 + $0x78] sm:$0xf] %v2870_v36  ;;  %v1032_v43 = vsel %vm317_vm0, %v1018_v38, %v3430_v1  ;;  %v1083_v49 = vsel %vm317_vm0, %v1069_v40, %v3430_v1  ;;  %v2946_v50 = vld [vmem:[#allocation10 + $0x50] sm:$0xf]  ;;  %v3113_v51 = vld [vmem:[#allocation10 + $0x54] sm:$0xf0]  ;;  %v1848_v54 = vsel %vm317_vm0, %v1834_v44, %v3430_v1  ;;  %v1899_v55 = vsel %vm317_vm0, %v1885_v45, %v3430_v1 }
  0x5a   : > { %v1034_v48 = vpack.c.bf16 0.0, %v1032_v43  ;;  %v3010_v52 = vld [vmem:[#allocation10 + $0xd0] sm:$0xf]  ;;  %1818 = vst [vmem:[#allocation10 + $0xf0] sm:$0xf] %v2900_v46  ;;  %v1085_v53 = vpack.c.bf16 0.0, %v1083_v49 }
  0x5b   : > { %v3129_v56 = vld [vmem:[#allocation10 + $0xd4] sm:$0xf0]  ;;  %1869 = vst [vmem:[#allocation10 + $0xf8] sm:$0xf] %v2902_v47  ;;  %v1850_v57 = vpack.c.bf16 0.0, %v1848_v54  ;;  %v1901_v58 = vpack.c.bf16 0.0, %v1899_v55 }
  0x5c   : > { %v2948_v60 = vld [vmem:[#allocation10 + $0x58] sm:$0xf0]  ;;  %1037 = vst [vmem:[#allocation10 + $0x74] sm:$0xf] %v1034_v48  ;;  %v2954_v8 = vld [vmem:[#allocation10 + $0x60] sm:$0xf] }
  0x5d   : > { %1088 = vst [vmem:[#allocation10 + $0x7c] sm:$0xf] %v1085_v53  ;;  %v2951_v2 = vor.u32 %v3112_v59, %v2948_v60  ;;  %v3115_v4 = vld [vmem:[#allocation10 + $0x64] sm:$0xf0]  ;;  %v3018_v5 = vld [vmem:[#allocation10 + $0xe0] sm:$0xf] }
  0x5e   : > { %1853 = vst [vmem:[#allocation10 + $0xf4] sm:$0xf] %v1850_v57  ;;  %v3131_v6 = vld [vmem:[#allocation10 + $0xe4] sm:$0xf0]  ;;  %v3114_v7 = vld [vmem:[#allocation10 + $0x64] sm:$0xf]  ;;  %v2955_v12 = vor.u32 %v3115_v4, %v2954_v8 }
  0x5f   : > { %1904 = vst [vmem:[#allocation10 + $0xfc] sm:$0xf] %v1901_v58  ;;  %v2956_v9 = vld [vmem:[#allocation10 + $0x68] sm:$0xf0]  ;;  %v3130_v10 = vld [vmem:[#allocation10 + $0xe4] sm:$0xf]  ;;  %v3019_v13 = vor.u32 %v3131_v6, %v3018_v5 }
  0x60   : > { %v3020_v11 = vld [vmem:[#allocation10 + $0xe8] sm:$0xf0]  ;;  %v2959_v14 = vor.u32 %v3114_v7, %v2956_v9  ;;  %v2962_v16 = vld [vmem:[#allocation10 + $0x70] sm:$0xf]  ;;  %v3117_v17 = vld [vmem:[#allocation10 + $0x74] sm:$0xf0] }
  0x61   : > { %v3023_v15 = vor.u32 %v3130_v10, %v3020_v11  ;;  %v3026_v18 = vld [vmem:[#allocation10 + $0xf0] sm:$0xf]  ;;  %v2963_v24 = vor.u32 %v3117_v17, %v2962_v16 }
  0x62   : > { %v3133_v19 = vld [vmem:[#allocation10 + $0xf4] sm:$0xf0] }
  0x63   : > { %v3116_v20 = vld [vmem:[#allocation10 + $0x74] sm:$0xf]  ;;  %v3027_v25 = vor.u32 %v3133_v19, %v3026_v18 }
  0x64   : > { %v2964_v21 = vld [vmem:[#allocation10 + $0x78] sm:$0xf0] }
  0x65   : > { %v3132_v22 = vld [vmem:[#allocation10 + $0xf4] sm:$0xf]  ;;  %v2967_v26 = vor.u32 %v3116_v20, %v2964_v21 }
  0x66   : > { %v3028_v23 = vld [vmem:[#allocation10 + $0xf8] sm:$0xf0] }
  0x67   : > { %2316 = vmatmul.bf16.gmra.mxu0 %v2931_v61  ;;  %2356 = vmatmul.bf16.gmra.mxu2 %v2995_v62  ;;  %v3128_v61 = vld [vmem:[#allocation10 + $0xd4] sm:$0xf]  ;;  %v3012_v62 = vld [vmem:[#allocation10 + $0xd8] sm:$0xf0]  ;;  %v3031_v27 = vor.u32 %v3132_v22, %v3028_v23 }
  0x68   : > { %2405 = vmatmul.bf16.gmra.mxu1 %v2935_v63  ;;  %2445 = vmatmul.bf16.gmra.mxu3 %v2999_v0  ;;  %v2947_v63 = vor.u32 %v3113_v51, %v2946_v50  ;;  %v3011_v0 = vor.u32 %v3129_v56, %v3010_v52  ;;  %v3015_v3 = vor.u32 %v3128_v61, %v3012_v62 }
  0x77   : > { %2321 = vmatmul.bf16.gmra.mxu0 %v2939_v31  ;;  %2361 = vmatmul.bf16.gmra.mxu2 %v3003_v32  ;;  %v3707_v31 = vld [vmem:[%s3802_s1] ss:$0 sm:$0xff] }
  0x78   : > { %2410 = vmatmul.bf16.gmra.mxu1 %v2943_v33  ;;  %2450 = vmatmul.bf16.gmra.mxu3 %v3007_v34 }
  0x87   : > { %2326 = vmatmul.bf16.gmra.mxu0 %v2947_v63  ;;  %2366 = vmatmul.bf16.gmra.mxu2 %v3011_v0 }
  0x88   : > { %2415 = vmatmul.bf16.gmra.mxu1 %v2951_v2  ;;  %2455 = vmatmul.bf16.gmra.mxu3 %v3015_v3 }
  0x97   : > { %2331 = vmatmul.bf16.gmra.mxu0 %v2955_v12  ;;  %2371 = vmatmul.bf16.gmra.mxu2 %v3019_v13 }
  0x98   : > { %2420 = vmatmul.bf16.gmra.mxu1 %v2959_v14  ;;  %2460 = vmatmul.bf16.gmra.mxu3 %v3023_v15 }
  0xa7   : > { %2336 = vmatmul.bf16.gmra.mxu0 %v2963_v24  ;;  %2376 = vmatmul.bf16.gmra.mxu2 %v3027_v25 }
  0xa8   : > { %2425 = vmatmul.bf16.gmra.mxu1 %v2967_v26  ;;  %2465 = vmatmul.bf16.gmra.mxu3 %v3031_v27 }
  0xb4   : > { %v2302_v28 = vpop.f32.mrf.mxu0 }
  0xb5   : > { %v2391_v29 = vpop.f32.mrf.mxu1 }
  0xb6   : > { %v2392_v30 = vadd.f32 %v2391_v29, %v2302_v28 }
  0xb8   : > { %v2574_v36 = vadd.f32 %v3707_v31, %v2392_v30 }
  0xba   : > { %v2342_v32 = vpop.f32.mrf.mxu2  ;;  %v2606_v40 = vmax.f32 %v2574_v36, 0.0 }
  0xbb   : > { %v2431_v33 = vpop.f32.mrf.mxu3 }
  0xbc   : > { %v2304_v34 = vpop.f32.mrf.mxu0  ;;  %v2432_v38 = vadd.f32 %v2431_v33, %v2342_v32 }
  0xbd   : > { %v2393_v35 = vpop.f32.mrf.mxu1 }
  0xbe   : > { %v2394_v37 = vadd.f32 %v2393_v35, %v2304_v34  ;;  %v2590_v44 = vadd.f32 %v3707_v31, %v2432_v38 }
  0xc0   : > { %v2575_v39 = vadd.f32 %v3707_v31, %v2394_v37  ;;  %v2622_v50 = vmax.f32 %v2590_v44, 0.0 }
  0xc2   : > { %v2607_v41 = vmax.f32 %v2575_v39, 0.0  ;;  %v2344_v42 = vpop.f32.mrf.mxu2 }
  0xc3   : > { %v2433_v43 = vpop.f32.mrf.mxu3 }
  0xc4   : > { %v3154_v45 = vpack.c.bf16 %v2607_v41, %v2606_v40  ;;  %v2434_v46 = vadd.f32 %v2433_v43, %v2344_v42  ;;  %v2307_v47 = vpop.f32.mrf.mxu0 }
  0xc5   : > { %v2396_v48 = vpop.f32.mrf.mxu1 }
  0xc6   : > { %3155 = vst [vmem:[%s3715_s11] sm:$0xff] %v3154_v45   ;;  %v2591_v49 = vadd.f32 %v3707_v31, %v2434_v46  ;;  %v2397_v53 = vadd.f32 %v2396_v48, %v2307_v47 }
  0xc8   : > { %v2623_v51 = vmax.f32 %v2591_v49, 0.0  ;;  %v2576_v58 = vadd.f32 %v3707_v31, %v2397_v53 }
  0xca   : > { %v3194_v52 = vpack.c.bf16 %v2623_v51, %v2622_v50  ;;  %v2347_v54 = vpop.f32.mrf.mxu2  ;;  %v2608_v62 = vmax.f32 %v2576_v58, 0.0 }
  0xcb   : > { %v2436_v55 = vpop.f32.mrf.mxu3 }
  0xcc   : > { %3238 = vst [vmem:[%s3715_s11 + $0x40] sm:$0xff] %v3194_v52   ;;  %v2309_v56 = vpop.f32.mrf.mxu0  ;;  %v2437_v60 = vadd.f32 %v2436_v55, %v2347_v54 }
  0xcd   : > { %v2398_v57 = vpop.f32.mrf.mxu1 }
  0xce   : > { %v2399_v59 = vadd.f32 %v2398_v57, %v2309_v56  ;;  %v2592_v3 = vadd.f32 %v3707_v31, %v2437_v60 }
  0xd0   : > { %v2577_v61 = vadd.f32 %v3707_v31, %v2399_v59  ;;  %v2624_v9 = vmax.f32 %v2592_v3, 0.0 }
  0xd2   : > { %v2609_v63 = vmax.f32 %v2577_v61, 0.0  ;;  %v2349_v0 = vpop.f32.mrf.mxu2 }
  0xd3   : > { %v2438_v2 = vpop.f32.mrf.mxu3 }
  0xd4   : > { %v3159_v8 = vpack.c.bf16 %v2609_v63, %v2608_v62  ;;  %v2439_v4 = vadd.f32 %v2438_v2, %v2349_v0  ;;  %v2312_v5 = vpop.f32.mrf.mxu0 }
  0xd5   : > { %v2401_v6 = vpop.f32.mrf.mxu1 }
  0xd6   : > { %3231 = vst [vmem:[%s3715_s11 + $0x8] sm:$0xff] %v3159_v8   ;;  %v2593_v7 = vadd.f32 %v3707_v31, %v2439_v4  ;;  %v2402_v12 = vadd.f32 %v2401_v6, %v2312_v5 }
  0xd8   : > { %v2625_v10 = vmax.f32 %v2593_v7, 0.0  ;;  %v2578_v17 = vadd.f32 %v3707_v31, %v2402_v12 }
  0xda   : > { %v3199_v11 = vpack.c.bf16 %v2625_v10, %v2624_v9  ;;  %v2352_v13 = vpop.f32.mrf.mxu2  ;;  %v2610_v21 = vmax.f32 %v2578_v17, 0.0 }
  0xdb   : > { %v2441_v14 = vpop.f32.mrf.mxu3 }
  0xdc   : > { %3239 = vst [vmem:[%s3715_s11 + $0x48] sm:$0xff] %v3199_v11   ;;  %v2314_v15 = vpop.f32.mrf.mxu0  ;;  %v2442_v19 = vadd.f32 %v2441_v14, %v2352_v13 }
  0xdd   : > { %v2403_v16 = vpop.f32.mrf.mxu1 }
  0xde   : > { %v2404_v18 = vadd.f32 %v2403_v16, %v2314_v15  ;;  %v2594_v25 = vadd.f32 %v3707_v31, %v2442_v19 }
  0xe0   : > { %v2579_v20 = vadd.f32 %v3707_v31, %v2404_v18  ;;  %v2626_v32 = vmax.f32 %v2594_v25, 0.0 }
  0xe2   : > { %v2611_v22 = vmax.f32 %v2579_v20, 0.0  ;;  %v2354_v23 = vpop.f32.mrf.mxu2 }
  0xe3   : > { %v2443_v24 = vpop.f32.mrf.mxu3 }
  0xe4   : > { %v3164_v26 = vpack.c.bf16 %v2611_v22, %v2610_v21  ;;  %v2444_v27 = vadd.f32 %v2443_v24, %v2354_v23  ;;  %v2317_v28 = vpop.f32.mrf.mxu0 }
  0xe5   : > { %v2406_v29 = vpop.f32.mrf.mxu1 }
  0xe6   : > { %3232 = vst [vmem:[%s3715_s11 + $0x10] sm:$0xff] %v3164_v26   ;;  %v2595_v30 = vadd.f32 %v3707_v31, %v2444_v27  ;;  %v2407_v35 = vadd.f32 %v2406_v29, %v2317_v28 }
  0xe8   : > { %v2627_v33 = vmax.f32 %v2595_v30, 0.0  ;;  %v2580_v40 = vadd.f32 %v3707_v31, %v2407_v35 }
  0xea   : > { %v3204_v34 = vpack.c.bf16 %v2627_v33, %v2626_v32  ;;  %v2357_v36 = vpop.f32.mrf.mxu2  ;;  %v2612_v44 = vmax.f32 %v2580_v40, 0.0 }
  0xeb   : > { %v2446_v37 = vpop.f32.mrf.mxu3 }
  0xec   : > { %3240 = vst [vmem:[%s3715_s11 + $0x50] sm:$0xff] %v3204_v34   ;;  %v2319_v38 = vpop.f32.mrf.mxu0  ;;  %v2447_v42 = vadd.f32 %v2446_v37, %v2357_v36 }
  0xed   : > { %v2408_v39 = vpop.f32.mrf.mxu1 }
  0xee   : > { %v2409_v41 = vadd.f32 %v2408_v39, %v2319_v38  ;;  %v2596_v48 = vadd.f32 %v3707_v31, %v2447_v42 }
  0xf0   : > { %v2581_v43 = vadd.f32 %v3707_v31, %v2409_v41  ;;  %v2628_v54 = vmax.f32 %v2596_v48, 0.0 }
  0xf2   : > { %v2613_v45 = vmax.f32 %v2581_v43, 0.0  ;;  %v2359_v46 = vpop.f32.mrf.mxu2 }
  0xf3   : > { %v2448_v47 = vpop.f32.mrf.mxu3 }
  0xf4   : > { %v3169_v49 = vpack.c.bf16 %v2613_v45, %v2612_v44  ;;  %v2449_v50 = vadd.f32 %v2448_v47, %v2359_v46  ;;  %v2322_v51 = vpop.f32.mrf.mxu0 }
  0xf5   : > { %v2411_v52 = vpop.f32.mrf.mxu1 }
  0xf6   : > { %3233 = vst [vmem:[%s3715_s11 + $0x18] sm:$0xff] %v3169_v49   ;;  %v2597_v53 = vadd.f32 %v3707_v31, %v2449_v50  ;;  %v2412_v57 = vadd.f32 %v2411_v52, %v2322_v51 }
  0xf8   : > { %v2629_v55 = vmax.f32 %v2597_v53, 0.0  ;;  %v2582_v62 = vadd.f32 %v3707_v31, %v2412_v57 }
  0xfa   : > { %v3209_v56 = vpack.c.bf16 %v2629_v55, %v2628_v54  ;;  %v2362_v58 = vpop.f32.mrf.mxu2  ;;  %v2614_v3 = vmax.f32 %v2582_v62, 0.0 }
  0xfb   : > { %v2451_v59 = vpop.f32.mrf.mxu3 }
  0xfc   : > { %3241 = vst [vmem:[%s3715_s11 + $0x58] sm:$0xff] %v3209_v56   ;;  %v2324_v60 = vpop.f32.mrf.mxu0  ;;  %v2452_v0 = vadd.f32 %v2451_v59, %v2362_v58 }
  0xfd   : > { %v2413_v61 = vpop.f32.mrf.mxu1 }
  0xfe   : > { %v2414_v63 = vadd.f32 %v2413_v61, %v2324_v60  ;;  %v2598_v6 = vadd.f32 %v3707_v31, %v2452_v0 }
 0x100   : > { %v2583_v2 = vadd.f32 %v3707_v31, %v2414_v63  ;;  %v2630_v13 = vmax.f32 %v2598_v6, 0.0 }
 0x102   : > { %v2615_v8 = vmax.f32 %v2583_v2, 0.0  ;;  %v2364_v4 = vpop.f32.mrf.mxu2 }
 0x103   : > { %v2453_v5 = vpop.f32.mrf.mxu3 }
 0x104   : > { %v3174_v7 = vpack.c.bf16 %v2615_v8, %v2614_v3  ;;  %v2454_v9 = vadd.f32 %v2453_v5, %v2364_v4  ;;  %v2327_v10 = vpop.f32.mrf.mxu0 }
 0x105   : > { %v2416_v11 = vpop.f32.mrf.mxu1 }
 0x106   : > { %3234 = vst [vmem:[%s3715_s11 + $0x20] sm:$0xff] %v3174_v7   ;;  %v2599_v12 = vadd.f32 %v3707_v31, %v2454_v9  ;;  %v2417_v16 = vadd.f32 %v2416_v11, %v2327_v10 }
 0x108   : > { %v2631_v14 = vmax.f32 %v2599_v12, 0.0  ;;  %v2584_v21 = vadd.f32 %v3707_v31, %v2417_v16 }
 0x10a   : > { %v3214_v15 = vpack.c.bf16 %v2631_v14, %v2630_v13  ;;  %v2367_v17 = vpop.f32.mrf.mxu2  ;;  %v2616_v25 = vmax.f32 %v2584_v21, 0.0 }
 0x10b   : > { %v2456_v18 = vpop.f32.mrf.mxu3 }
 0x10c   : > { %3242 = vst [vmem:[%s3715_s11 + $0x60] sm:$0xff] %v3214_v15   ;;  %v2329_v19 = vpop.f32.mrf.mxu0  ;;  %v2457_v23 = vadd.f32 %v2456_v18, %v2367_v17 }
 0x10d   : > { %v2418_v20 = vpop.f32.mrf.mxu1 }
 0x10e   : > { %v2419_v22 = vadd.f32 %v2418_v20, %v2329_v19  ;;  %v2600_v29 = vadd.f32 %v3707_v31, %v2457_v23 }
 0x110   : > { %v2585_v24 = vadd.f32 %v3707_v31, %v2419_v22  ;;  %v2632_v36 = vmax.f32 %v2600_v29, 0.0 }
 0x112   : > { %v2617_v26 = vmax.f32 %v2585_v24, 0.0  ;;  %v2369_v27 = vpop.f32.mrf.mxu2 }
 0x113   : > { %v2458_v28 = vpop.f32.mrf.mxu3 }
 0x114   : > { %v3179_v30 = vpack.c.bf16 %v2617_v26, %v2616_v25  ;;  %v2459_v32 = vadd.f32 %v2458_v28, %v2369_v27  ;;  %v2332_v33 = vpop.f32.mrf.mxu0 }
 0x115   : > { %v2421_v34 = vpop.f32.mrf.mxu1 }
 0x116   : > { %3235 = vst [vmem:[%s3715_s11 + $0x28] sm:$0xff] %v3179_v30   ;;  %v2601_v35 = vadd.f32 %v3707_v31, %v2459_v32  ;;  %v2422_v39 = vadd.f32 %v2421_v34, %v2332_v33 }
 0x118   : > { %v2633_v37 = vmax.f32 %v2601_v35, 0.0  ;;  %v2586_v44 = vadd.f32 %v3707_v31, %v2422_v39 }
 0x11a   : > { %v3219_v38 = vpack.c.bf16 %v2633_v37, %v2632_v36  ;;  %v2372_v40 = vpop.f32.mrf.mxu2  ;;  %v2618_v48 = vmax.f32 %v2586_v44, 0.0 }
 0x11b   : > { %v2461_v41 = vpop.f32.mrf.mxu3 }
 0x11c   : > { %3243 = vst [vmem:[%s3715_s11 + $0x68] sm:$0xff] %v3219_v38   ;;  %v2334_v42 = vpop.f32.mrf.mxu0  ;;  %v2462_v46 = vadd.f32 %v2461_v41, %v2372_v40 }
 0x11d   : > { %v2423_v43 = vpop.f32.mrf.mxu1 }
 0x11e   : > { %v2424_v45 = vadd.f32 %v2423_v43, %v2334_v42  ;;  %v2602_v52 = vadd.f32 %v3707_v31, %v2462_v46 }
 0x120   : > { %v2587_v47 = vadd.f32 %v3707_v31, %v2424_v45  ;;  %v2634_v58 = vmax.f32 %v2602_v52, 0.0 }
 0x122   : > { %v2619_v49 = vmax.f32 %v2587_v47, 0.0  ;;  %v2374_v50 = vpop.f32.mrf.mxu2 }
 0x123   : > { %v2463_v51 = vpop.f32.mrf.mxu3 }
 0x124   : > { %v3184_v53 = vpack.c.bf16 %v2619_v49, %v2618_v48  ;;  %v2464_v54 = vadd.f32 %v2463_v51, %v2374_v50  ;;  %v2337_v55 = vpop.f32.mrf.mxu0 }
 0x125   : > { %v2426_v56 = vpop.f32.mrf.mxu1 }
 0x126   : > { %3236 = vst [vmem:[%s3715_s11 + $0x30] sm:$0xff] %v3184_v53   ;;  %v2603_v57 = vadd.f32 %v3707_v31, %v2464_v54  ;;  %v2427_v61 = vadd.f32 %v2426_v56, %v2337_v55 }
 0x128   : > { %v2635_v59 = vmax.f32 %v2603_v57, 0.0  ;;  %v2588_v3 = vadd.f32 %v3707_v31, %v2427_v61 }
 0x12a   : > { %v3224_v60 = vpack.c.bf16 %v2635_v59, %v2634_v58  ;;  %v2377_v62 = vpop.f32.mrf.mxu2  ;;  %v2620_v6 = vmax.f32 %v2588_v3, 0.0 }
 0x12b   : > { %v2466_v63 = vpop.f32.mrf.mxu3 }
 0x12c   : > { %3244 = vst [vmem:[%s3715_s11 + $0x70] sm:$0xff] %v3224_v60   ;;  %v2339_v0 = vpop.f32.mrf.mxu0  ;;  %v2467_v4 = vadd.f32 %v2466_v63, %v2377_v62 }
 0x12d   : > { %v2428_v2 = vpop.f32.mrf.mxu1 }
 0x12e   : > { %v2429_v8 = vadd.f32 %v2428_v2, %v2339_v0  ;;  %v2604_v11 = vadd.f32 %v3707_v31, %v2467_v4 }
 0x130   : > { %v2589_v5 = vadd.f32 %v3707_v31, %v2429_v8  ;;  %v2636_v15 = vmax.f32 %v2604_v11, 0.0 }
 0x132   : > { %v2621_v7 = vmax.f32 %v2589_v5, 0.0  ;;  %v2379_v9 = vpop.f32.mrf.mxu2 }
 0x133   : > { %v2468_v10 = vpop.f32.mrf.mxu3 }
 0x134   : > { %v3189_v12 = vpack.c.bf16 %v2621_v7, %v2620_v6  ;;  %v2469_v13 = vadd.f32 %v2468_v10, %v2379_v9 }
 0x136   : > { %3237 = vst [vmem:[%s3715_s11 + $0x38] sm:$0xff] %v3189_v12   ;;  %v2605_v14 = vadd.f32 %v3707_v31, %v2469_v13 }
 0x138   : > { %v2637_v16 = vmax.f32 %v2605_v14, 0.0 }
 0x13a   : > { %v3229_v17 = vpack.c.bf16 %v2637_v16, %v2636_v15 }
 0x13c   : > { %3245 = vst [vmem:[%s3715_s11 + $0x78] sm:$0xff] %v3229_v17  }
 0x13d   : > { %3347 = shalt.err (!%p3344_p5)
}
 0x13e   : > { %s3400_s8 = smov 64   ;;  %s3401_s9 = smov 4  }
 0x13f   : > { %3262 = dma.vmem_to_hbm [thread:$0]  (%p3472_p4), %s2717_s16, 2048, %s2719_s20, %s2703_s3, %s3400_s8, %s3400_s8, %s3401_s9  }
 0x140 PF: > { %p3268_p6 = scmp.ge.s32.totalorder %s3398_s22, 2  ;;  %s2733_s10 = sand.u32 1, %s3378_s17  }
 0x141   : > { %s2734_s11 = scalar_lea.sflag [#allocation9], %s2733_s10 }
 0x142   : > { %p3265_p7 = pnand %p3268_p6, %p3479_p8 }
 0x144   : > { %p3266_p9 = pneg %p3265_p7 }
 0x146   : > { %3373 = dma.done.wait (%p3266_p9), %s2734_s11, 2048  }
 0x147   : > { %3375 = vsyncadd (%p3266_p9), %s2734_s11, 4294965248  ;;  %s22_s22 = sadd.s32 1, %s3398_s22   ;;  %s3808_s17 = smov %s3382_s18 }
 0x148   : > { %p19_p10 = scmp.ge.s32.totalorder %s22_s22, 10   ;;  %s3809_s18 = smov %s3386_s19 }
 0x149   : > { %s3810_s19 = smov %s3485_s29  ;;  %s3811_s20 = smov %s3394_s21 }
 0x14a   : > { %s3812_s21 = smov %s3814_s24  ;;  %21 = sbr.rel (!%p19_p10) target bundleno = 7 (0x7), region = 207 }
 0x14f   :  { %2740 = vsyncpa [#allocation9], 1 }
 0x150   :  { %2742 = vsyncpa [#allocation9 + $0x1], 1 }

</bundles_post_ra>
